<compile_context>
chip_gen: v6e
topology: v6e:2x2x1
jax: 0.10.0
libtpu: 0.0.40
codegen_flags: <defaults>
</compile_context>

<pallas_src>
import jax
import jax.numpy as jnp
from jax.experimental import pallas as pl
from jax.experimental.pallas import tpu as pltpu

BN_EPS = 1e-5
LANE = 128                   # lane-dense padding width
HID = (64, 32, 16)           # hidden sizes of the three LinearBlocks
TARGET_ROWS = 512            # target TB*B rows fed to the MXU per grid step
MATMUL_DTYPE = jnp.float32   # set to jnp.bfloat16 on v6e/v7x for large T*B


def _maml_kernel(x_ref, w_ref, v_ref, out_ref):
    # x_ref  : [TB, B, 128]   TB task-batches per grid step, zero-padded lanes
    # w_ref  : [4, 128, 128]  W1, W2, W3, W_logits ([in, out]), zero-padded
    # v_ref  : [8, 128]       g1, b1, g2, b2, g3, b3, logits bias, 0
    # out_ref: [TB, B, 128]   logits, zero-padded to 128 lanes
    tb, b, lane = x_ref.shape
    inv_b = 1.0 / b

    # Flatten tasks into the row (sublane) dimension so every matmul sees
    # TB*B rows instead of B rows.
    h = x_ref[...].reshape(tb * b, lane)

    def matmul(h, w):
        return jnp.dot(h.astype(MATMUL_DTYPE), w.astype(MATMUL_DTYPE),
                       preferred_element_type=jnp.float32)

    def linear_bn_relu(h, w, gamma, beta):
        y = matmul(h, w).reshape(tb, b, lane)
        # Per-task training-mode BatchNorm1d: biased batch stats, two-pass
        # variance in f32 (robust against large pre-activation means).
        mean = jnp.sum(y, axis=1, keepdims=True) * inv_b          # [TB,1,128]
        var = jnp.sum((y - mean) ** 2, axis=1, keepdims=True) * inv_b
        # Fold BN into one scale/shift (the Linear bias cancels exactly under
        # y - mean(y), so it is never DMA'd or added).
        scale = gamma * jax.lax.rsqrt(var + BN_EPS)                # [TB,1,128]
        shift = beta - mean * scale
        return jnp.maximum(y * scale + shift, 0.0).reshape(tb * b, lane)

    h = linear_bn_relu(h, w_ref[0], v_ref[0:1, :], v_ref[1:2, :])
    h = linear_bn_relu(h, w_ref[1], v_ref[2:3, :], v_ref[3:4, :])
    h = linear_bn_relu(h, w_ref[2], v_ref[4:5, :], v_ref[5:6, :])
    # flatten(start_dim=1) is a no-op for 2-D per-task activations.
    logits = matmul(h, w_ref[3]) + v_ref[6:7, :]
    out_ref[...] = logits.reshape(tb, b, lane).astype(out_ref.dtype)


def _pad2(a, rows, cols, dtype):
    a = a.astype(dtype)
    return jnp.pad(a, ((0, rows - a.shape[0]), (0, cols - a.shape[1])))


def _pad1(v):
    return jnp.pad(v.astype(jnp.float32), (0, LANE - v.shape[0]))


def pack_params(params):
    """Pack parameters into one weight slab + one vector slab (lane-dense).

    One jnp.pad per parameter + one jnp.stack per slab (cheap under jit); if
    params are reused across calls, cache/store them in this packed form and
    skip repacking entirely.
    """
    w_slab = jnp.stack([
        _pad2(params["l1.w"], LANE, LANE, MATMUL_DTYPE),
        _pad2(params["l2.w"], LANE, LANE, MATMUL_DTYPE),
        _pad2(params["l3.w"], LANE, LANE, MATMUL_DTYPE),
        _pad2(params["logits.w"], LANE, LANE, MATMUL_DTYPE),
    ])
    v_slab = jnp.stack([
        _pad1(params["l1.gamma"]), _pad1(params["l1.beta"]),
        _pad1(params["l2.gamma"]), _pad1(params["l2.beta"]),
        _pad1(params["l3.gamma"]), _pad1(params["l3.beta"]),
        _pad1(params["logits.b"]), jnp.zeros((LANE,), jnp.float32),
    ])
    # NOTE: l{1,2,3}.b are intentionally NOT packed: training-mode BatchNorm
    # subtracts the per-feature batch mean, so constant biases cancel exactly.
    return w_slab, v_slab


@jax.jit
def maml_forward(x, params):
    """x: [T, B, in_size] (or [B, in_size]) float32.  params: dict (see init)."""
    squeeze = (x.ndim == 2)
    if squeeze:
        x = x[None]
    T, B, in_size = x.shape
    n_way = params["logits.w"].shape[1]

    # Task-batching: TB tasks per grid step so each step feeds ~TARGET_ROWS
    # rows to the MXU; for small T this collapses to a single grid step.
    tb = min(T, max(1, pl.cdiv(TARGET_ROWS, B)))
    n_steps = pl.cdiv(T, tb)
    t_pad = n_steps * tb

    w_slab, v_slab = pack_params(params)
    x_pad = jnp.pad(x.astype(jnp.float32),
                    ((0, t_pad - T), (0, 0), (0, LANE - in_size)))

    grid_spec = pltpu.PrefetchScalarGridSpec(
        num_scalar_prefetch=0,
        grid=(n_steps,),
        in_specs=[
            pl.BlockSpec((tb, B, LANE), lambda t: (t, 0, 0)),
            # Grid-invariant parameter slabs stay resident in VMEM across all
            # steps.  (Could additionally be single-buffered via
            # pipeline_mode=pl.Buffered(1); left default for portability.)
            pl.BlockSpec((4, LANE, LANE), lambda t: (0, 0, 0)),
            pl.BlockSpec((8, LANE), lambda t: (0, 0)),
        ],
        out_specs=pl.BlockSpec((tb, B, LANE), lambda t: (t, 0, 0)),
    )

    out = pl.pallas_call(
        _maml_kernel,
        out_shape=jax.ShapeDtypeStruct((t_pad, B, LANE), jnp.float32),
        grid_spec=grid_spec,
        compiler_params=pltpu.CompilerParams(
            dimension_semantics=("parallel",)),  # megacore / v7x 2-TC sharding
    )(x_pad, w_slab, v_slab)

    out = out[:T, :, :n_way]
    return out[0] if squeeze else out


def init_params(key, in_size, n_way):
    """Deterministic synthetic parameter init (PyTorch-like uniform fan-in).
    Weights are stored transposed vs PyTorch, i.e. [in, out]."""
    dims = [(in_size, HID[0]), (HID[0], HID[1]), (HID[1], HID[2])]
    keys = iter(jax.random.split(key, 16))
    params = {}
    for i, (din, dout) in enumerate(dims, start=1):
        bound = 1.0 / (din ** 0.5)
        params[f"l{i}.w"] = jax.random.uniform(
            next(keys), (din, dout), jnp.float32, -bound, bound)
        params[f"l{i}.b"] = jax.random.uniform(
            next(keys), (dout,), jnp.float32, -bound, bound)
        params[f"l{i}.gamma"] = 1.0 + 0.1 * jax.random.normal(
            next(keys), (dout,), jnp.float32)
        params[f"l{i}.beta"] = 0.1 * jax.random.normal(
            next(keys), (dout,), jnp.float32)
    bound = 1.0 / (HID[2] ** 0.5)
    params["logits.w"] = jax.random.uniform(
        next(keys), (HID[2], n_way), jnp.float32, -bound, bound)
    params["logits.b"] = jax.random.uniform(
        next(keys), (n_way,), jnp.float32, -bound, bound)
    return params


def reference_forward(x, params):
    """Pure-JAX reference matching PyTorch semantics (per-task-batch BN,
    Linear biases included — the kernel drops them because they cancel)."""
    def one_task(xt):
        h = xt
        for i in (1, 2, 3):
            y = h @ params[f"l{i}.w"] + params[f"l{i}.b"]
            mean = jnp.mean(y, axis=0, keepdims=True)
            var = jnp.mean((y - mean) ** 2, axis=0, keepdims=True)
            y = (y - mean) * jax.lax.rsqrt(var + BN_EPS)
            y = y * params[f"l{i}.gamma"] + params[f"l{i}.beta"]
            h = jnp.maximum(y, 0.0)
        return h @ params["logits.w"] + params["logits.b"]
    if x.ndim == 2:
        return one_task(x)
    return jax.vmap(one_task)(x)


if __name__ == "__main__":
    key = jax.random.PRNGKey(0)
    k_x, k_p = jax.random.split(key)

    tasks, batch, in_size, n_way = 4, 8, 20, 5
    x = jax.random.normal(k_x, (tasks, batch, in_size), jnp.float32)
    params = init_params(k_p, in_size, n_way)

    out = jax.block_until_ready(maml_forward(x, params))
    ref = reference_forward(x, params)

    assert out.shape == (tasks, batch, n_way)
    assert jnp.allclose(out, ref, atol=2e-4, rtol=2e-4), "mismatch vs reference"

    print("KERNEL_OK")
</pallas_src>

<mosaic_0001>
module attributes {stable_mosaic.version = 11 : i64} {
  func.func @_maml_kernel(%arg0: i32, %arg1: memref<4x8x128xf32, #tpu.memory_space<vmem>>, %arg2: memref<4x128x128xf32, #tpu.memory_space<vmem>>, %arg3: memref<8x128xf32, #tpu.memory_space<vmem>>, %arg4: memref<4x8x128xf32, #tpu.memory_space<vmem>>) attributes {dimension_semantics = [#tpu.dimension_semantics<parallel>], iteration_bounds = array<i64: 1>, scalar_prefetch = 0 : i64, scratch_operands = 0 : i64, tpu.core_type = #tpu.core_type<tc>, window_params = [{transform_indices = @transform_0, window_bounds = array<i64: 4, 8, 128>}, {pipeline_mode = #tpu.pipeline_mode<synchronous>, transform_indices = @transform_1, window_bounds = array<i64: 4, 128, 128>}, {pipeline_mode = #tpu.pipeline_mode<synchronous>, transform_indices = @transform_2, window_bounds = array<i64: 8, 128>}, {transform_indices = @transform_3, window_bounds = array<i64: 4, 8, 128>}]} {
    %c0 = arith.constant 0 : index
    %c0_0 = arith.constant 0 : index
    %c0_1 = arith.constant 0 : index
    %0 = vector.load %arg1[%c0, %c0_0, %c0_1] : memref<4x8x128xf32, #tpu.memory_space<vmem>>, vector<4x8x128xf32>
    %1 = vector.shape_cast %0 : vector<4x8x128xf32> to vector<32x128xf32>
    %c0_2 = arith.constant 0 : index
    %c0_3 = arith.constant 0 : index
    %c0_4 = arith.constant 0 : index
    %2 = vector.load %arg2[%c0_2, %c0_3, %c0_4] : memref<4x128x128xf32, #tpu.memory_space<vmem>>, vector<1x128x128xf32>
    %3 = vector.shape_cast %2 : vector<1x128x128xf32> to vector<128x128xf32>
    %c0_5 = arith.constant 0 : index
    %c0_6 = arith.constant 0 : index
    %4 = vector.load %arg3[%c0_5, %c0_6] : memref<8x128xf32, #tpu.memory_space<vmem>>, vector<1x128xf32>
    %c1 = arith.constant 1 : index
    %c0_7 = arith.constant 0 : index
    %5 = vector.load %arg3[%c1, %c0_7] : memref<8x128xf32, #tpu.memory_space<vmem>>, vector<1x128xf32>
    %cst = arith.constant dense<0.000000e+00> : vector<32x128xf32>
    %6 = tpu.matmul %1, %3, %cst {dimension_numbers = #tpu.dot_dimension_numbers<[1], [0], [0], [1], [0, 0, 1, 1], [], []>} : vector<32x128xf32>, vector<128x128xf32>, vector<32x128xf32> -> vector<32x128xf32>
    %7 = vector.shape_cast %6 : vector<32x128xf32> to vector<4x8x128xf32>
    %cst_8 = arith.constant dense<0.000000e+00> : vector<4x128xf32>
    %8 = vector.multi_reduction <add>, %7, %cst_8 [1] : vector<4x8x128xf32> to vector<4x128xf32>
    %9 = vector.shape_cast %8 : vector<4x128xf32> to vector<4x1x128xf32>
    %cst_9 = arith.constant 1.250000e-01 : f32
    %10 = vector.broadcast %cst_9 : f32 to vector<4x1x128xf32>
    %11 = arith.mulf %9, %10 : vector<4x1x128xf32>
    %12 = vector.broadcast %11 : vector<4x1x128xf32> to vector<4x8x128xf32>
    %13 = arith.subf %7, %12 : vector<4x8x128xf32>
    %14 = arith.mulf %13, %13 : vector<4x8x128xf32>
    %cst_10 = arith.constant dense<0.000000e+00> : vector<4x128xf32>
    %15 = vector.multi_reduction <add>, %14, %cst_10 [1] : vector<4x8x128xf32> to vector<4x128xf32>
    %16 = vector.shape_cast %15 : vector<4x128xf32> to vector<4x1x128xf32>
    %cst_11 = arith.constant 1.250000e-01 : f32
    %17 = vector.broadcast %cst_11 : f32 to vector<4x1x128xf32>
    %18 = arith.mulf %16, %17 : vector<4x1x128xf32>
    %cst_12 = arith.constant 9.99999974E-6 : f32
    %19 = vector.broadcast %cst_12 : f32 to vector<4x1x128xf32>
    %20 = arith.addf %18, %19 : vector<4x1x128xf32>
    %21 = math.rsqrt %20 : vector<4x1x128xf32>
    %22 = vector.shape_cast %4 : vector<1x128xf32> to vector<1x1x128xf32>
    %23 = vector.broadcast %22 : vector<1x1x128xf32> to vector<4x1x128xf32>
    %24 = arith.mulf %23, %21 : vector<4x1x128xf32>
    %25 = arith.mulf %11, %24 : vector<4x1x128xf32>
    %26 = vector.shape_cast %5 : vector<1x128xf32> to vector<1x1x128xf32>
    %27 = vector.broadcast %26 : vector<1x1x128xf32> to vector<4x1x128xf32>
    %28 = arith.subf %27, %25 : vector<4x1x128xf32>
    %29 = vector.broadcast %24 : vector<4x1x128xf32> to vector<4x8x128xf32>
    %30 = arith.mulf %7, %29 : vector<4x8x128xf32>
    %31 = vector.broadcast %28 : vector<4x1x128xf32> to vector<4x8x128xf32>
    %32 = arith.addf %30, %31 : vector<4x8x128xf32>
    %cst_13 = arith.constant 0.000000e+00 : f32
    %33 = vector.broadcast %cst_13 : f32 to vector<4x8x128xf32>
    %34 = arith.maximumf %32, %33 : vector<4x8x128xf32>
    %35 = vector.shape_cast %34 : vector<4x8x128xf32> to vector<32x128xf32>
    %c1_14 = arith.constant 1 : index
    %c0_15 = arith.constant 0 : index
    %c0_16 = arith.constant 0 : index
    %36 = vector.load %arg2[%c1_14, %c0_15, %c0_16] : memref<4x128x128xf32, #tpu.memory_space<vmem>>, vector<1x128x128xf32>
    %37 = vector.shape_cast %36 : vector<1x128x128xf32> to vector<128x128xf32>
    %c2 = arith.constant 2 : index
    %c0_17 = arith.constant 0 : index
    %38 = vector.load %arg3[%c2, %c0_17] : memref<8x128xf32, #tpu.memory_space<vmem>>, vector<1x128xf32>
    %c3 = arith.constant 3 : index
    %c0_18 = arith.constant 0 : index
    %39 = vector.load %arg3[%c3, %c0_18] : memref<8x128xf32, #tpu.memory_space<vmem>>, vector<1x128xf32>
    %cst_19 = arith.constant dense<0.000000e+00> : vector<32x128xf32>
    %40 = tpu.matmul %35, %37, %cst_19 {dimension_numbers = #tpu.dot_dimension_numbers<[1], [0], [0], [1], [0, 0, 1, 1], [], []>} : vector<32x128xf32>, vector<128x128xf32>, vector<32x128xf32> -> vector<32x128xf32>
    %41 = vector.shape_cast %40 : vector<32x128xf32> to vector<4x8x128xf32>
    %cst_20 = arith.constant dense<0.000000e+00> : vector<4x128xf32>
    %42 = vector.multi_reduction <add>, %41, %cst_20 [1] : vector<4x8x128xf32> to vector<4x128xf32>
    %43 = vector.shape_cast %42 : vector<4x128xf32> to vector<4x1x128xf32>
    %cst_21 = arith.constant 1.250000e-01 : f32
    %44 = vector.broadcast %cst_21 : f32 to vector<4x1x128xf32>
    %45 = arith.mulf %43, %44 : vector<4x1x128xf32>
    %46 = vector.broadcast %45 : vector<4x1x128xf32> to vector<4x8x128xf32>
    %47 = arith.subf %41, %46 : vector<4x8x128xf32>
    %48 = arith.mulf %47, %47 : vector<4x8x128xf32>
    %cst_22 = arith.constant dense<0.000000e+00> : vector<4x128xf32>
    %49 = vector.multi_reduction <add>, %48, %cst_22 [1] : vector<4x8x128xf32> to vector<4x128xf32>
    %50 = vector.shape_cast %49 : vector<4x128xf32> to vector<4x1x128xf32>
    %cst_23 = arith.constant 1.250000e-01 : f32
    %51 = vector.broadcast %cst_23 : f32 to vector<4x1x128xf32>
    %52 = arith.mulf %50, %51 : vector<4x1x128xf32>
    %cst_24 = arith.constant 9.99999974E-6 : f32
    %53 = vector.broadcast %cst_24 : f32 to vector<4x1x128xf32>
    %54 = arith.addf %52, %53 : vector<4x1x128xf32>
    %55 = math.rsqrt %54 : vector<4x1x128xf32>
    %56 = vector.shape_cast %38 : vector<1x128xf32> to vector<1x1x128xf32>
    %57 = vector.broadcast %56 : vector<1x1x128xf32> to vector<4x1x128xf32>
    %58 = arith.mulf %57, %55 : vector<4x1x128xf32>
    %59 = arith.mulf %45, %58 : vector<4x1x128xf32>
    %60 = vector.shape_cast %39 : vector<1x128xf32> to vector<1x1x128xf32>
    %61 = vector.broadcast %60 : vector<1x1x128xf32> to vector<4x1x128xf32>
    %62 = arith.subf %61, %59 : vector<4x1x128xf32>
    %63 = vector.broadcast %58 : vector<4x1x128xf32> to vector<4x8x128xf32>
    %64 = arith.mulf %41, %63 : vector<4x8x128xf32>
    %65 = vector.broadcast %62 : vector<4x1x128xf32> to vector<4x8x128xf32>
    %66 = arith.addf %64, %65 : vector<4x8x128xf32>
    %cst_25 = arith.constant 0.000000e+00 : f32
    %67 = vector.broadcast %cst_25 : f32 to vector<4x8x128xf32>
    %68 = arith.maximumf %66, %67 : vector<4x8x128xf32>
    %69 = vector.shape_cast %68 : vector<4x8x128xf32> to vector<32x128xf32>
    %c2_26 = arith.constant 2 : index
    %c0_27 = arith.constant 0 : index
    %c0_28 = arith.constant 0 : index
    %70 = vector.load %arg2[%c2_26, %c0_27, %c0_28] : memref<4x128x128xf32, #tpu.memory_space<vmem>>, vector<1x128x128xf32>
    %71 = vector.shape_cast %70 : vector<1x128x128xf32> to vector<128x128xf32>
    %c4 = arith.constant 4 : index
    %c0_29 = arith.constant 0 : index
    %72 = vector.load %arg3[%c4, %c0_29] : memref<8x128xf32, #tpu.memory_space<vmem>>, vector<1x128xf32>
    %c5 = arith.constant 5 : index
    %c0_30 = arith.constant 0 : index
    %73 = vector.load %arg3[%c5, %c0_30] : memref<8x128xf32, #tpu.memory_space<vmem>>, vector<1x128xf32>
    %cst_31 = arith.constant dense<0.000000e+00> : vector<32x128xf32>
    %74 = tpu.matmul %69, %71, %cst_31 {dimension_numbers = #tpu.dot_dimension_numbers<[1], [0], [0], [1], [0, 0, 1, 1], [], []>} : vector<32x128xf32>, vector<128x128xf32>, vector<32x128xf32> -> vector<32x128xf32>
    %75 = vector.shape_cast %74 : vector<32x128xf32> to vector<4x8x128xf32>
    %cst_32 = arith.constant dense<0.000000e+00> : vector<4x128xf32>
    %76 = vector.multi_reduction <add>, %75, %cst_32 [1] : vector<4x8x128xf32> to vector<4x128xf32>
    %77 = vector.shape_cast %76 : vector<4x128xf32> to vector<4x1x128xf32>
    %cst_33 = arith.constant 1.250000e-01 : f32
    %78 = vector.broadcast %cst_33 : f32 to vector<4x1x128xf32>
    %79 = arith.mulf %77, %78 : vector<4x1x128xf32>
    %80 = vector.broadcast %79 : vector<4x1x128xf32> to vector<4x8x128xf32>
    %81 = arith.subf %75, %80 : vector<4x8x128xf32>
    %82 = arith.mulf %81, %81 : vector<4x8x128xf32>
    %cst_34 = arith.constant dense<0.000000e+00> : vector<4x128xf32>
    %83 = vector.multi_reduction <add>, %82, %cst_34 [1] : vector<4x8x128xf32> to vector<4x128xf32>
    %84 = vector.shape_cast %83 : vector<4x128xf32> to vector<4x1x128xf32>
    %cst_35 = arith.constant 1.250000e-01 : f32
    %85 = vector.broadcast %cst_35 : f32 to vector<4x1x128xf32>
    %86 = arith.mulf %84, %85 : vector<4x1x128xf32>
    %cst_36 = arith.constant 9.99999974E-6 : f32
    %87 = vector.broadcast %cst_36 : f32 to vector<4x1x128xf32>
    %88 = arith.addf %86, %87 : vector<4x1x128xf32>
    %89 = math.rsqrt %88 : vector<4x1x128xf32>
    %90 = vector.shape_cast %72 : vector<1x128xf32> to vector<1x1x128xf32>
    %91 = vector.broadcast %90 : vector<1x1x128xf32> to vector<4x1x128xf32>
    %92 = arith.mulf %91, %89 : vector<4x1x128xf32>
    %93 = arith.mulf %79, %92 : vector<4x1x128xf32>
    %94 = vector.shape_cast %73 : vector<1x128xf32> to vector<1x1x128xf32>
    %95 = vector.broadcast %94 : vector<1x1x128xf32> to vector<4x1x128xf32>
    %96 = arith.subf %95, %93 : vector<4x1x128xf32>
    %97 = vector.broadcast %92 : vector<4x1x128xf32> to vector<4x8x128xf32>
    %98 = arith.mulf %75, %97 : vector<4x8x128xf32>
    %99 = vector.broadcast %96 : vector<4x1x128xf32> to vector<4x8x128xf32>
    %100 = arith.addf %98, %99 : vector<4x8x128xf32>
    %cst_37 = arith.constant 0.000000e+00 : f32
    %101 = vector.broadcast %cst_37 : f32 to vector<4x8x128xf32>
    %102 = arith.maximumf %100, %101 : vector<4x8x128xf32>
    %103 = vector.shape_cast %102 : vector<4x8x128xf32> to vector<32x128xf32>
    %c3_38 = arith.constant 3 : index
    %c0_39 = arith.constant 0 : index
    %c0_40 = arith.constant 0 : index
    %104 = vector.load %arg2[%c3_38, %c0_39, %c0_40] : memref<4x128x128xf32, #tpu.memory_space<vmem>>, vector<1x128x128xf32>
    %105 = vector.shape_cast %104 : vector<1x128x128xf32> to vector<128x128xf32>
    %cst_41 = arith.constant dense<0.000000e+00> : vector<32x128xf32>
    %106 = tpu.matmul %103, %105, %cst_41 {dimension_numbers = #tpu.dot_dimension_numbers<[1], [0], [0], [1], [0, 0, 1, 1], [], []>} : vector<32x128xf32>, vector<128x128xf32>, vector<32x128xf32> -> vector<32x128xf32>
    %c6 = arith.constant 6 : index
    %c0_42 = arith.constant 0 : index
    %107 = vector.load %arg3[%c6, %c0_42] : memref<8x128xf32, #tpu.memory_space<vmem>>, vector<1x128xf32>
    %108 = vector.broadcast %107 : vector<1x128xf32> to vector<32x128xf32>
    %109 = arith.addf %106, %108 : vector<32x128xf32>
    %110 = vector.shape_cast %109 : vector<32x128xf32> to vector<4x8x128xf32>
    %c0_43 = arith.constant 0 : index
    %c0_44 = arith.constant 0 : index
    %c0_45 = arith.constant 0 : index
    %111 = vector.load %arg4[%c0_43, %c0_44, %c0_45] : memref<4x8x128xf32, #tpu.memory_space<vmem>>, vector<4x8x128xf32>
    tpu.vector_store %arg4[%c0_43, %c0_44, %c0_45], %110 {strides = array<i32>} : memref<4x8x128xf32, #tpu.memory_space<vmem>>, vector<4x8x128xf32>,
    return
  }
  func.func @transform_0(%arg0: i32) -> (i32, i32, i32) {
    %c0_i32 = arith.constant 0 : i32
    %c0_i32_0 = arith.constant 0 : i32
    %c0_i32_1 = arith.constant 0 : i32
    return %arg0, %c0_i32, %c0_i32_0 : i32, i32, i32
  }
  func.func @transform_1(%arg0: i32) -> (i32, i32, i32) {
    %c0_i32 = arith.constant 0 : i32
    %c0_i32_0 = arith.constant 0 : i32
    %c0_i32_1 = arith.constant 0 : i32
    %c0_i32_2 = arith.constant 0 : i32
    return %c0_i32, %c0_i32_0, %c0_i32_1 : i32, i32, i32
  }
  func.func @transform_2(%arg0: i32) -> (i32, i32) {
    %c0_i32 = arith.constant 0 : i32
    %c0_i32_0 = arith.constant 0 : i32
    %c0_i32_1 = arith.constant 0 : i32
    return %c0_i32, %c0_i32_0 : i32, i32
  }
  func.func @transform_3(%arg0: i32) -> (i32, i32, i32) {
    %c0_i32 = arith.constant 0 : i32
    %c0_i32_0 = arith.constant 0 : i32
    %c0_i32_1 = arith.constant 0 : i32
    return %arg0, %c0_i32, %c0_i32_0 : i32, i32, i32
  }
}

</mosaic_0001>

<bundles_post_ra>
// kernel: maml_forward.1
= control target key start
LH: loop header
LB: loop body
LE: loop exit
PB: predicated region body
PF: predicated region fallthrough
CT: control target
= control target key end

     0   :  { %s1496_s1 = inlined_call_operand.vmem [shape: f32[4,128,128], index: 1, kind: input, shape index: {}]   ;;  %s1497_s0 = inlined_call_operand.vmem [shape: f32[4,8,128], index: 0, kind: input, shape index: {}]   ;;  %s1498_s2 = inlined_call_operand.vmem [shape: f32[8,128], index: 2, kind: input, shape index: {}]   ;;  %s1499_s3 = inlined_call_operand.vmem [shape: f32[4,8,128], index: 3, kind: output, shape index: {}]  }
   0x1   :  { %v33_v0 = vld [vmem:[%s1496_s1 + $0x78] sm:$0xff]  ;;  %v32_v1 = vld [vmem:[%s1496_s1 + $0x70] sm:$0xff]  ;;  %v31_v2 = vld [vmem:[%s1496_s1 + $0x68] sm:$0xff] }
   0x2   :  { %957 = vmatprep.subr.mxu0 %v33_v0  ;;  %v30_v3 = vld [vmem:[%s1496_s1 + $0x60] sm:$0xff]  ;;  %v29_v5 = vld [vmem:[%s1496_s1 + $0x58] sm:$0xff]  ;;  %v28_v6 = vld [vmem:[%s1496_s1 + $0x50] sm:$0xff] }
   0x3   :  { %958 = vmatpush3.msra.mxu0 %v33_v0  ;;  %v14_v4 = vld [vmem:[%s1497_s0] sm:$0xff]  ;;  %v27_v7 = vld [vmem:[%s1496_s1 + $0x48] sm:$0xff]  ;;  %v25_v9 = vld [vmem:[%s1496_s1 + $0x38] sm:$0xff] }
   0x4   :  { %959 = vmatprep.subr.mxu0 %v32_v1  ;;  %989 = vmatprep.mubr.f32.mxu0 %v14_v4  ;;  %v26_v8 = vld [vmem:[%s1496_s1 + $0x40] sm:$0xff]  ;;  %v24_v10 = vld [vmem:[%s1496_s1 + $0x30] sm:$0xff]  ;;  %v23_v11 = vld [vmem:[%s1496_s1 + $0x28] sm:$0xff] }
   0x5   :  { %960 = vmatpush3.msra.mxu0 %v32_v1  ;;  %v22_v12 = vld [vmem:[%s1496_s1 + $0x20] sm:$0xff]  ;;  %v21_v13 = vld [vmem:[%s1496_s1 + $0x18] sm:$0xff]  ;;  %v20_v14 = vld [vmem:[%s1496_s1 + $0x10] sm:$0xff] }
   0x6   :  { %961 = vmatprep.subr.mxu0 %v31_v2  ;;  %v19_v15 = vld [vmem:[%s1496_s1 + $0x8] sm:$0xff]  ;;  %v18_v16 = vld [vmem:[%s1496_s1] sm:$0xff]  ;;  %v16_v18 = vld [vmem:[%s1497_s0 + $0x10] sm:$0xff] }
   0x7   :  { %962 = vmatpush3.msra.mxu0 %v31_v2  ;;  %v15_v17 = vld [vmem:[%s1497_s0 + $0x8] sm:$0xff]  ;;  %v17_v19 = vld [vmem:[%s1497_s0 + $0x18] sm:$0xff]  ;;  %v842_v21 = vld [vmem:[%s1496_s1 + $0xf0] sm:$0xff] }
   0x8   :  { %963 = vmatprep.subr.mxu0 %v30_v3  ;;  %v843_v20 = vld [vmem:[%s1496_s1 + $0xf8] sm:$0xff]  ;;  %v841_v22 = vld [vmem:[%s1496_s1 + $0xe8] sm:$0xff]  ;;  %v840_v23 = vld [vmem:[%s1496_s1 + $0xe0] sm:$0xff] }
   0x9   :  { %964 = vmatpush3.msra.mxu0 %v30_v3  ;;  %995 = vmatprep.subr.mxu1 %v843_v20  ;;  %v839_v24 = vld [vmem:[%s1496_s1 + $0xd8] sm:$0xff]  ;;  %v838_v25 = vld [vmem:[%s1496_s1 + $0xd0] sm:$0xff]  ;;  %v837_v26 = vld [vmem:[%s1496_s1 + $0xc8] sm:$0xff] }
   0xa   :  { %965 = vmatprep.subr.mxu0 %v29_v5  ;;  %996 = vmatpush3.msra.mxu1 %v843_v20  ;;  %v836_v27 = vld [vmem:[%s1496_s1 + $0xc0] sm:$0xff]  ;;  %v835_v28 = vld [vmem:[%s1496_s1 + $0xb8] sm:$0xff]  ;;  %v834_v29 = vld [vmem:[%s1496_s1 + $0xb0] sm:$0xff] }
   0xb   :  { %966 = vmatpush3.msra.mxu0 %v29_v5  ;;  %997 = vmatprep.subr.mxu1 %v842_v21  ;;  %v833_v30 = vld [vmem:[%s1496_s1 + $0xa8] sm:$0xff]  ;;  %v832_v31 = vld [vmem:[%s1496_s1 + $0xa0] sm:$0xff]  ;;  %v831_v32 = vld [vmem:[%s1496_s1 + $0x98] sm:$0xff] }
   0xc   :  { %967 = vmatprep.subr.mxu0 %v28_v6  ;;  %998 = vmatpush3.msra.mxu1 %v842_v21  ;;  %v830_v33 = vld [vmem:[%s1496_s1 + $0x90] sm:$0xff]  ;;  %v829_v34 = vld [vmem:[%s1496_s1 + $0x88] sm:$0xff]  ;;  %v828_v35 = vld [vmem:[%s1496_s1 + $0x80] sm:$0xff] }
   0xd   :  { %968 = vmatpush3.msra.mxu0 %v28_v6  ;;  %999 = vmatprep.subr.mxu1 %v841_v22 }
   0xe   :  { %969 = vmatprep.subr.mxu0 %v27_v7  ;;  %1000 = vmatpush3.msra.mxu1 %v841_v22 }
   0xf   :  { %970 = vmatpush3.msra.mxu0 %v27_v7  ;;  %1001 = vmatprep.subr.mxu1 %v840_v23 }
  0x10   :  { %971 = vmatprep.subr.mxu0 %v26_v8  ;;  %1002 = vmatpush3.msra.mxu1 %v840_v23 }
  0x11   :  { %972 = vmatpush3.msra.mxu0 %v26_v8  ;;  %1003 = vmatprep.subr.mxu1 %v839_v24 }
  0x12   :  { %973 = vmatprep.subr.mxu0 %v25_v9  ;;  %1004 = vmatpush3.msra.mxu1 %v839_v24 }
  0x13   :  { %974 = vmatpush3.msra.mxu0 %v25_v9  ;;  %1005 = vmatprep.subr.mxu1 %v838_v25 }
  0x14   :  { %975 = vmatprep.subr.mxu0 %v24_v10  ;;  %1006 = vmatpush3.msra.mxu1 %v838_v25 }
  0x15   :  { %976 = vmatpush3.msra.mxu0 %v24_v10  ;;  %1007 = vmatprep.subr.mxu1 %v837_v26 }
  0x16   :  { %977 = vmatprep.subr.mxu0 %v23_v11  ;;  %1008 = vmatpush3.msra.mxu1 %v837_v26 }
  0x17   :  { %978 = vmatpush3.msra.mxu0 %v23_v11  ;;  %1009 = vmatprep.subr.mxu1 %v836_v27 }
  0x18   :  { %979 = vmatprep.subr.mxu0 %v22_v12  ;;  %1010 = vmatpush3.msra.mxu1 %v836_v27 }
  0x19   :  { %980 = vmatpush3.msra.mxu0 %v22_v12  ;;  %1011 = vmatprep.subr.mxu1 %v835_v28 }
  0x1a   :  { %981 = vmatprep.subr.mxu0 %v21_v13  ;;  %1012 = vmatpush3.msra.mxu1 %v835_v28 }
  0x1b   :  { %982 = vmatpush3.msra.mxu0 %v21_v13  ;;  %1013 = vmatprep.subr.mxu1 %v834_v29 }
  0x1c   :  { %983 = vmatprep.subr.mxu0 %v20_v14  ;;  %1014 = vmatpush3.msra.mxu1 %v834_v29 }
  0x1d   :  { %984 = vmatpush3.msra.mxu0 %v20_v14  ;;  %1015 = vmatprep.subr.mxu1 %v833_v30 }
  0x1e   :  { %985 = vmatprep.subr.mxu0 %v19_v15  ;;  %1016 = vmatpush3.msra.mxu1 %v833_v30 }
  0x1f   :  { %986 = vmatpush3.msra.mxu0 %v19_v15  ;;  %1017 = vmatprep.subr.mxu1 %v832_v31 }
  0x20   :  { %987 = vmatprep.subr.mxu0 %v18_v16  ;;  %1018 = vmatpush3.msra.mxu1 %v832_v31 }
  0x21   :  { %988 = vmatpush3.msra.mxu0 %v18_v16  ;;  %1019 = vmatprep.subr.mxu1 %v831_v32 }
  0x22   :  { %990 = vmatmul.mubr.f32.vlgmr.msra.gmra.mxu0 %v15_v17  ;;  %1020 = vmatpush3.msra.mxu1 %v831_v32 }
  0x23   :  { %992 = vmatprep.mubr.f32.mxu0 %v16_v18  ;;  %1021 = vmatprep.subr.mxu1 %v830_v33 }
  0x24   :  { %1022 = vmatpush3.msra.mxu1 %v830_v33 }
  0x25   :  { %1023 = vmatprep.subr.mxu1 %v829_v34 }
  0x26   :  { %993 = vmatmul.mubr.f32.gmra.mxu0 %v17_v19  ;;  %1024 = vmatpush3.msra.mxu1 %v829_v34 }
  0x27   :  { %1025 = vmatprep.subr.mxu1 %v828_v35 }
  0x28   :  { %1026 = vmatpush3.msra.mxu1 %v828_v35 }
  0xe2   :  { %v1261_v36 = vpop.f32.mrf.mxu0 }
  0xe3   :  { %v127_v37 = vrot.slane %v1261_v36, 4 }
  0xe4   :  { %v1264_v38 = vpop.f32.mrf.mxu0 }
  0xe5   :  { %v128_v39 = vadd.f32 %v1261_v36, %v127_v37  ;;  %v121_v40 = vrot.slane %v1264_v38, 4 }
  0xe6   :  { %v1268_v41 = vpop.f32.mrf.mxu0 }
  0xe7   :  { %v129_v42 = vrot.slane %v128_v39, 2  ;;  %v122_v43 = vadd.f32 %v121_v40, %v1264_v38  ;;  %v139_v44 = vrot.slane %v1268_v41, 4 }
  0xe8   :  { %v1272_v45 = vpop.f32.mrf.mxu0 }
  0xe9   :  { %v130_v46 = vadd.f32 %v129_v42, %v128_v39  ;;  %v123_v47 = vrot.slane %v122_v43, 2  ;;  %v140_v48 = vadd.f32 %v1268_v41, %v139_v44  ;;  %v133_v49 = vrot.slane %v1272_v45, 4 }
  0xeb   :  { %v131_v50 = vrot.slane %v130_v46, 1  ;;  %v124_v51 = vadd.f32 %v123_v47, %v122_v43  ;;  %v141_v52 = vrot.slane %v140_v48, 2  ;;  %v134_v53 = vadd.f32 %v133_v49, %v1272_v45 }
  0xed   :  { %v132_v54 = vadd.f32 %v131_v50, %v130_v46  ;;  %v125_v55 = vrot.slane %v124_v51, 1  ;;  %v142_v56 = vadd.f32 %v141_v52, %v140_v48  ;;  %v135_v57 = vrot.slane %v134_v53, 2  ;;  %v34_v50 = vld [vmem:[%s1498_s2] sm:$0x1] }
  0xee   :  { %v205_v48 = vlaneseq }
  0xef   :  { %v146_v58 = vmul.f32 0.125, %v132_v54  ;;  %v126_v59 = vadd.f32 %v125_v55, %v124_v51  ;;  %v143_v60 = vrot.slane %v142_v56, 1  ;;  %v136_v61 = vadd.f32 %v135_v57, %v134_v53 }
  0xf0   :  { %v206_v49 = vshrl.u32 %v205_v48, 7 }
  0xf1   :  { %v150_v62 = vsub.f32 %v1261_v36, %v146_v58  ;;  %v1278_v63 = vmul.f32 0.125, %v126_v59  ;;  %v144_v0 = vadd.f32 %v143_v60, %v142_v56  ;;  %v137_v1 = vrot.slane %v136_v61, 1  ;;  %v35_v56 = vld [vmem:[%s1498_s2 + $0x1] sm:$0x1] }
  0xf2   :  { %v1290_v52 = vsub.s32 0, %v206_v49 }
  0xf3   :  { %v154_v2 = vmul.f32 %v150_v62, %v150_v62  ;;  %v149_v3 = vsub.f32 %v1264_v38, %v1278_v63  ;;  %v148_v4 = vmul.f32 0.125, %v144_v0  ;;  %v138_v5 = vadd.f32 %v137_v1, %v136_v61 }
  0xf5   :  { %v163_v6 = vrot.slane %v154_v2, 4  ;;  %v153_v7 = vmul.f32 %v149_v3, %v149_v3  ;;  %v152_v8 = vsub.f32 %v1268_v41, %v148_v4  ;;  %v1283_v9 = vmul.f32 0.125, %v138_v5 }
  0xf7   :  { %v164_v10 = vadd.f32 %v163_v6, %v154_v2  ;;  %v157_v11 = vrot.slane %v153_v7, 4  ;;  %v156_v12 = vmul.f32 %v152_v8, %v152_v8  ;;  %v151_v13 = vsub.f32 %v1272_v45, %v1283_v9 }
  0xf9   :  { %v165_v14 = vrot.slane %v164_v10, 2  ;;  %v158_v15 = vadd.f32 %v157_v11, %v153_v7  ;;  %v175_v16 = vrot.slane %v156_v12, 4  ;;  %v155_v17 = vmul.f32 %v151_v13, %v151_v13 }
  0xfb   :  { %v166_v18 = vadd.f32 %v165_v14, %v164_v10  ;;  %v159_v19 = vrot.slane %v158_v15, 2  ;;  %v176_v20 = vadd.f32 %v175_v16, %v156_v12  ;;  %v169_v21 = vrot.slane %v155_v17, 4 }
  0xfd   :  { %v167_v22 = vrot.slane %v166_v18, 1  ;;  %v160_v23 = vadd.f32 %v159_v19, %v158_v15  ;;  %v177_v24 = vrot.slane %v176_v20, 2  ;;  %v170_v25 = vadd.f32 %v169_v21, %v155_v17 }
  0xff   :  { %v168_v26 = vadd.f32 %v167_v22, %v166_v18  ;;  %v161_v27 = vrot.slane %v160_v23, 1  ;;  %v178_v28 = vadd.f32 %v177_v24, %v176_v20  ;;  %v171_v29 = vrot.slane %v170_v25, 2  ;;  %v856_v24 = vld [vmem:[%s1496_s1 + $0x160] sm:$0xff] }
 0x101   :  { %v182_v30 = vmul.f32 0.125, %v168_v26  ;;  %v162_v31 = vadd.f32 %v161_v27, %v160_v23  ;;  %v179_v32 = vrot.slane %v178_v28, 1  ;;  %v172_v33 = vadd.f32 %v171_v29, %v170_v25  ;;  %v857_v23 = vld [vmem:[%s1496_s1 + $0x168] sm:$0xff]  ;;  %v855_v25 = vld [vmem:[%s1496_s1 + $0x158] sm:$0xff]  ;;  %v854_v26 = vld [vmem:[%s1496_s1 + $0x150] sm:$0xff] }
 0x102   :  { %v853_v27 = vld [vmem:[%s1496_s1 + $0x148] sm:$0xff]  ;;  %v851_v29 = vld [vmem:[%s1496_s1 + $0x138] sm:$0xff] }
 0x103   :  { %v186_v34 = vadd.f32 1e-05, %v182_v30  ;;  %v181_v35 = vmul.f32 0.125, %v162_v31  ;;  %v180_v37 = vadd.f32 %v179_v32, %v178_v28  ;;  %v173_v39 = vrot.slane %v172_v33, 1  ;;  %v852_v28 = vld [vmem:[%s1496_s1 + $0x140] sm:$0xff]  ;;  %v850_v30 = vld [vmem:[%s1496_s1 + $0x130] sm:$0xff] }
 0x104   :  { %v849_v31 = vld [vmem:[%s1496_s1 + $0x128] sm:$0xff]  ;;  %v848_v32 = vld [vmem:[%s1496_s1 + $0x120] sm:$0xff] }
 0x105   :  { %1109 = vrsqrt.f32 %v186_v34  ;;  %v185_v40 = vadd.f32 1e-05, %v181_v35  ;;  %v184_v42 = vmul.f32 0.125, %v180_v37  ;;  %v174_v43 = vadd.f32 %v173_v39, %v172_v33  ;;  %v847_v33 = vld [vmem:[%s1496_s1 + $0x118] sm:$0xff]  ;;  %v846_v34 = vld [vmem:[%s1496_s1 + $0x110] sm:$0xff]  ;;  %v845_v35 = vld [vmem:[%s1496_s1 + $0x108] sm:$0xff] }
 0x106   :  { %v844_v37 = vld [vmem:[%s1496_s1 + $0x100] sm:$0xff] }
 0x107   :  { %1111 = vrsqrt.f32 %v185_v40  ;;  %v188_v44 = vadd.f32 1e-05, %v184_v42  ;;  %v183_v46 = vmul.f32 0.125, %v174_v43 }
 0x109   :  { %1113 = vrsqrt.f32 %v188_v44  ;;  %v187_v47 = vadd.f32 1e-05, %v183_v46 }
 0x10b   :  { %1115 = vrsqrt.f32 %v187_v47 }
 0x112   :  { %v1110_v51 = vpop.eup %1109 }
 0x113   :  { %v194_v53 = vmul.f32 %v1110_v51, %v34_v50 }
 0x114   :  { %v1112_v54 = vpop.eup %1111 }
 0x115   :  { %v198_v55 = vmul.f32 %v194_v53, %v146_v58  ;;  %v193_v57 = vmul.f32 %v1112_v54, %v34_v50  ;;  %v212_v60 = vrot.slane %v194_v53, %v1290_v52 }
 0x116   :  { %v1114_v59 = vpop.eup %1113 }
 0x117   :  { %v196_v61 = vmul.f32 %v1114_v59, %v34_v50  ;;  %v197_v62 = vmul.f32 %v193_v57, %v1278_v63  ;;  %v208_v0 = vrot.slane %v193_v57, %v1290_v52  ;;  %v202_v2 = vsub.f32 %v35_v56, %v198_v55 }
 0x118   :  { %v1116_v1 = vpop.eup %1115  ;;  %v222_v58 = vmul.f32 %v1261_v36, %v212_v60 }
 0x119   :  { %v200_v3 = vmul.f32 %v196_v61, %v148_v4  ;;  %v195_v5 = vmul.f32 %v1116_v1, %v34_v50  ;;  %v201_v6 = vsub.f32 %v35_v56, %v197_v62  ;;  %v220_v7 = vrot.slane %v196_v61, %v1290_v52 }
 0x11a   :  { %v232_v8 = vrot.slane %v202_v2, %v1290_v52  ;;  %v221_v12 = vmul.f32 %v208_v0, %v1264_v38 }
 0x11b   :  { %v199_v10 = vmul.f32 %v195_v5, %v1283_v9  ;;  %v216_v11 = vrot.slane %v195_v5, %v1290_v52  ;;  %v228_v63 = vrot.slane %v201_v6, %v1290_v52  ;;  %v204_v14 = vsub.f32 %v35_v56, %v200_v3 }
 0x11c   :  { %v242_v13 = vadd.f32 %v232_v8, %v222_v58  ;;  %v224_v16 = vmul.f32 %v1268_v41, %v220_v7  ;;  %v859_v41 = vld [vmem:[%s1496_s1 + $0x178] sm:$0xff] }
 0x11d   :  { %v241_v15 = vadd.f32 %v228_v63, %v221_v12  ;;  %v203_v4 = vsub.f32 %v35_v56, %v199_v10  ;;  %v240_v36 = vrot.slane %v204_v14, %v1290_v52  ;;  %v223_v17 = vmul.f32 %v216_v11, %v1272_v45  ;;  %1033 = vmatprep.subr.mxu0 %v859_v41  ;;  %v858_v45 = vld [vmem:[%s1496_s1 + $0x170] sm:$0xff] }
 0x11e   :  { %v246_v9 = vmax.f32 %v242_v13, 0.0  ;;  %1034 = vmatpush3.msra.mxu0 %v859_v41 }
 0x11f   :  { %v245_v18 = vmax.f32 %v241_v15, 0.0  ;;  %v236_v19 = vrot.slane %v203_v4, %v1290_v52  ;;  %v244_v20 = vadd.f32 %v240_v36, %v224_v16  ;;  %1035 = vmatprep.subr.mxu0 %v858_v45 }
 0x120   :  { %1036 = vmatpush3.msra.mxu0 %v858_v45 }
 0x121   :  { %1027 = vmatprep.mubr.f32.mxu1 %v245_v18  ;;  %v243_v21 = vadd.f32 %v236_v19, %v223_v17  ;;  %v248_v22 = vmax.f32 %v244_v20, 0.0  ;;  %1037 = vmatprep.subr.mxu0 %v857_v23 }
 0x122   :  { %1028 = vmatmul.mubr.f32.vlgmr.msra.gmra.mxu1 %v246_v9  ;;  %1038 = vmatpush3.msra.mxu0 %v857_v23 }
 0x123   :  { %v247_v38 = vmax.f32 %v243_v21, 0.0  ;;  %1039 = vmatprep.subr.mxu0 %v856_v24 }
 0x124   :  { %1040 = vmatpush3.msra.mxu0 %v856_v24 }
 0x125   :  { %1030 = vmatprep.mubr.f32.mxu1 %v247_v38  ;;  %1041 = vmatprep.subr.mxu0 %v855_v25 }
 0x126   :  { %1031 = vmatmul.mubr.f32.gmra.mxu1 %v248_v22  ;;  %1042 = vmatpush3.msra.mxu0 %v855_v25 }
 0x127   :  { %1043 = vmatprep.subr.mxu0 %v854_v26 }
 0x128   :  { %1044 = vmatpush3.msra.mxu0 %v854_v26 }
 0x129   :  { %1045 = vmatprep.subr.mxu0 %v853_v27 }
 0x12a   :  { %1046 = vmatpush3.msra.mxu0 %v853_v27 }
 0x12b   :  { %1047 = vmatprep.subr.mxu0 %v852_v28 }
 0x12c   :  { %1048 = vmatpush3.msra.mxu0 %v852_v28 }
 0x12d   :  { %1049 = vmatprep.subr.mxu0 %v851_v29 }
 0x12e   :  { %1050 = vmatpush3.msra.mxu0 %v851_v29 }
 0x12f   :  { %1051 = vmatprep.subr.mxu0 %v850_v30 }
 0x130   :  { %1052 = vmatpush3.msra.mxu0 %v850_v30 }
 0x131   :  { %1053 = vmatprep.subr.mxu0 %v849_v31 }
 0x132   :  { %1054 = vmatpush3.msra.mxu0 %v849_v31 }
 0x133   :  { %1055 = vmatprep.subr.mxu0 %v848_v32 }
 0x134   :  { %1056 = vmatpush3.msra.mxu0 %v848_v32 }
 0x135   :  { %1057 = vmatprep.subr.mxu0 %v847_v33 }
 0x136   :  { %1058 = vmatpush3.msra.mxu0 %v847_v33 }
 0x137   :  { %1059 = vmatprep.subr.mxu0 %v846_v34 }
 0x138   :  { %1060 = vmatpush3.msra.mxu0 %v846_v34 }
 0x139   :  { %1061 = vmatprep.subr.mxu0 %v845_v35 }
 0x13a   :  { %1062 = vmatpush3.msra.mxu0 %v845_v35 }
 0x13b   :  { %1063 = vmatprep.subr.mxu0 %v844_v37 }
 0x13c   :  { %1064 = vmatpush3.msra.mxu0 %v844_v37 }
 0x1e2   :  { %v1357_v39 = vpop.f32.mrf.mxu1 }
 0x1e3   :  { %v359_v40 = vrot.slane %v1357_v39, 4 }
 0x1e4   :  { %v1360_v42 = vpop.f32.mrf.mxu1 }
 0x1e5   :  { %v360_v43 = vadd.f32 %v1357_v39, %v359_v40  ;;  %v353_v44 = vrot.slane %v1360_v42, 4 }
 0x1e6   :  { %v1364_v46 = vpop.f32.mrf.mxu1 }
 0x1e7   :  { %v361_v47 = vrot.slane %v360_v43, 2  ;;  %v354_v48 = vadd.f32 %v353_v44, %v1360_v42  ;;  %v371_v49 = vrot.slane %v1364_v46, 4 }
 0x1e8   :  { %v1368_v50 = vpop.f32.mrf.mxu1 }
 0x1e9   :  { %v362_v51 = vadd.f32 %v361_v47, %v360_v43  ;;  %v355_v53 = vrot.slane %v354_v48, 2  ;;  %v372_v54 = vadd.f32 %v1364_v46, %v371_v49  ;;  %v365_v55 = vrot.slane %v1368_v50, 4 }
 0x1eb   :  { %v363_v56 = vrot.slane %v362_v51, 1  ;;  %v356_v57 = vadd.f32 %v355_v53, %v354_v48  ;;  %v373_v59 = vrot.slane %v372_v54, 2  ;;  %v366_v60 = vadd.f32 %v365_v55, %v1368_v50  ;;  %v266_v55 = vld [vmem:[%s1498_s2 + $0x2] sm:$0x1] }
 0x1ed   :  { %v364_v61 = vadd.f32 %v363_v56, %v362_v51  ;;  %v357_v62 = vrot.slane %v356_v57, 1  ;;  %v374_v0 = vadd.f32 %v373_v59, %v372_v54  ;;  %v367_v1 = vrot.slane %v366_v60, 2 }
 0x1ef   :  { %v378_v2 = vmul.f32 0.125, %v364_v61  ;;  %v358_v3 = vadd.f32 %v357_v62, %v356_v57  ;;  %v375_v5 = vrot.slane %v374_v0, 1  ;;  %v368_v6 = vadd.f32 %v367_v1, %v366_v60  ;;  %v267_v60 = vld [vmem:[%s1498_s2 + $0x3] sm:$0x1] }
 0x1f1   :  { %v382_v58 = vsub.f32 %v1357_v39, %v378_v2  ;;  %v377_v7 = vmul.f32 0.125, %v358_v3  ;;  %v376_v8 = vadd.f32 %v375_v5, %v374_v0  ;;  %v369_v10 = vrot.slane %v368_v6, 1 }
 0x1f3   :  { %v386_v11 = vmul.f32 %v382_v58, %v382_v58  ;;  %v381_v12 = vsub.f32 %v1360_v42, %v377_v7  ;;  %v380_v63 = vmul.f32 0.125, %v376_v8  ;;  %v370_v13 = vadd.f32 %v369_v10, %v368_v6 }
 0x1f5   :  { %v395_v14 = vrot.slane %v386_v11, 4  ;;  %v385_v15 = vmul.f32 %v381_v12, %v381_v12  ;;  %v384_v4 = vsub.f32 %v1364_v46, %v380_v63  ;;  %v379_v16 = vmul.f32 0.125, %v370_v13 }
 0x1f7   :  { %v396_v36 = vadd.f32 %v395_v14, %v386_v11  ;;  %v389_v17 = vrot.slane %v385_v15, 4  ;;  %v388_v18 = vmul.f32 %v384_v4, %v384_v4  ;;  %v383_v19 = vsub.f32 %v1368_v50, %v379_v16 }
 0x1f9   :  { %v397_v9 = vrot.slane %v396_v36, 2  ;;  %v390_v20 = vadd.f32 %v389_v17, %v385_v15  ;;  %v407_v21 = vrot.slane %v388_v18, 4  ;;  %v387_v38 = vmul.f32 %v383_v19, %v383_v19 }
 0x1fb   :  { %v398_v22 = vadd.f32 %v397_v9, %v396_v36  ;;  %v391_v41 = vrot.slane %v390_v20, 2  ;;  %v408_v45 = vadd.f32 %v407_v21, %v388_v18  ;;  %v401_v23 = vrot.slane %v387_v38, 4 }
 0x1fd   :  { %v399_v24 = vrot.slane %v398_v22, 1  ;;  %v392_v25 = vadd.f32 %v391_v41, %v390_v20  ;;  %v409_v26 = vrot.slane %v408_v45, 2  ;;  %v402_v27 = vadd.f32 %v401_v23, %v387_v38  ;;  %v873_v23 = vld [vmem:[%s1496_s1 + $0x1e8] sm:$0xff] }
 0x1ff   :  { %v400_v28 = vadd.f32 %v399_v24, %v398_v22  ;;  %v393_v29 = vrot.slane %v392_v25, 1  ;;  %v410_v30 = vadd.f32 %v409_v26, %v408_v45  ;;  %v403_v31 = vrot.slane %v402_v27, 2  ;;  %v872_v24 = vld [vmem:[%s1496_s1 + $0x1e0] sm:$0xff]  ;;  %v870_v26 = vld [vmem:[%s1496_s1 + $0x1d0] sm:$0xff] }
 0x201   :  { %v414_v32 = vmul.f32 0.125, %v400_v28  ;;  %v394_v33 = vadd.f32 %v393_v29, %v392_v25  ;;  %v411_v34 = vrot.slane %v410_v30, 1  ;;  %v404_v35 = vadd.f32 %v403_v31, %v402_v27  ;;  %v871_v25 = vld [vmem:[%s1496_s1 + $0x1d8] sm:$0xff]  ;;  %v869_v27 = vld [vmem:[%s1496_s1 + $0x1c8] sm:$0xff]  ;;  %v868_v28 = vld [vmem:[%s1496_s1 + $0x1c0] sm:$0xff] }
 0x202   :  { %v867_v29 = vld [vmem:[%s1496_s1 + $0x1b8] sm:$0xff]  ;;  %v865_v31 = vld [vmem:[%s1496_s1 + $0x1a8] sm:$0xff] }
 0x203   :  { %v418_v37 = vadd.f32 1e-05, %v414_v32  ;;  %v413_v40 = vmul.f32 0.125, %v394_v33  ;;  %v412_v43 = vadd.f32 %v411_v34, %v410_v30  ;;  %v405_v44 = vrot.slane %v404_v35, 1  ;;  %v866_v30 = vld [vmem:[%s1496_s1 + $0x1b0] sm:$0xff]  ;;  %v864_v32 = vld [vmem:[%s1496_s1 + $0x1a0] sm:$0xff] }
 0x204   :  { %v863_v33 = vld [vmem:[%s1496_s1 + $0x198] sm:$0xff]  ;;  %v862_v34 = vld [vmem:[%s1496_s1 + $0x190] sm:$0xff] }
 0x205   :  { %1117 = vrsqrt.f32 %v418_v37  ;;  %v417_v47 = vadd.f32 1e-05, %v413_v40  ;;  %v416_v48 = vmul.f32 0.125, %v412_v43  ;;  %v406_v49 = vadd.f32 %v405_v44, %v404_v35  ;;  %v861_v35 = vld [vmem:[%s1496_s1 + $0x188] sm:$0xff]  ;;  %v860_v37 = vld [vmem:[%s1496_s1 + $0x180] sm:$0xff] }
 0x207   :  { %1119 = vrsqrt.f32 %v417_v47  ;;  %v420_v51 = vadd.f32 1e-05, %v416_v48  ;;  %v415_v53 = vmul.f32 0.125, %v406_v49 }
 0x209   :  { %1121 = vrsqrt.f32 %v420_v51  ;;  %v419_v54 = vadd.f32 1e-05, %v415_v53 }
 0x20b   :  { %1123 = vrsqrt.f32 %v419_v54 }
 0x212   :  { %v1118_v56 = vpop.eup %1117 }
 0x213   :  { %v426_v57 = vmul.f32 %v1118_v56, %v266_v55 }
 0x214   :  { %v1120_v59 = vpop.eup %1119 }
 0x215   :  { %v430_v61 = vmul.f32 %v426_v57, %v378_v2  ;;  %v425_v62 = vmul.f32 %v1120_v59, %v266_v55  ;;  %v444_v1 = vrot.slane %v426_v57, %v1290_v52 }
 0x216   :  { %v1122_v0 = vpop.eup %1121 }
 0x217   :  { %v434_v3 = vsub.f32 %v267_v60, %v430_v61  ;;  %v429_v5 = vmul.f32 %v425_v62, %v377_v7  ;;  %v440_v6 = vrot.slane %v425_v62, %v1290_v52  ;;  %v428_v8 = vmul.f32 %v1122_v0, %v266_v55 }
 0x218   :  { %v1124_v58 = vpop.eup %1123  ;;  %v454_v13 = vmul.f32 %v1357_v39, %v444_v1 }
 0x219   :  { %v464_v10 = vrot.slane %v434_v3, %v1290_v52  ;;  %v427_v11 = vmul.f32 %v1124_v58, %v266_v55  ;;  %v433_v12 = vsub.f32 %v267_v60, %v429_v5  ;;  %v432_v14 = vmul.f32 %v428_v8, %v380_v63 }
 0x21a   :  { %v452_v15 = vrot.slane %v428_v8, %v1290_v52  ;;  %v453_v2 = vmul.f32 %v440_v6, %v1360_v42 }
 0x21b   :  { %v431_v4 = vmul.f32 %v427_v11, %v379_v16  ;;  %v448_v36 = vrot.slane %v427_v11, %v1290_v52  ;;  %v460_v7 = vrot.slane %v433_v12, %v1290_v52  ;;  %v474_v17 = vadd.f32 %v464_v10, %v454_v13 }
 0x21c   :  { %v436_v18 = vsub.f32 %v267_v60, %v432_v14  ;;  %v456_v20 = vmul.f32 %v1364_v46, %v452_v15  ;;  %v875_v46 = vld [vmem:[%s1496_s1 + $0x1f8] sm:$0xff] }
 0x21d   :  { %v473_v19 = vadd.f32 %v460_v7, %v453_v2  ;;  %v435_v9 = vsub.f32 %v267_v60, %v431_v4  ;;  %v455_v39 = vmul.f32 %v448_v36, %v1368_v50  ;;  %v478_v22 = vmax.f32 %v474_v17, 0.0  ;;  %1071 = vmatprep.subr.mxu1 %v875_v46  ;;  %v874_v50 = vld [vmem:[%s1496_s1 + $0x1f0] sm:$0xff] }
 0x21e   :  { %v472_v21 = vrot.slane %v436_v18, %v1290_v52  ;;  %1072 = vmatpush3.msra.mxu1 %v875_v46 }
 0x21f   :  { %v477_v63 = vmax.f32 %v473_v19, 0.0  ;;  %v468_v38 = vrot.slane %v435_v9, %v1290_v52  ;;  %1073 = vmatprep.subr.mxu1 %v874_v50 }
 0x220   :  { %v476_v42 = vadd.f32 %v472_v21, %v456_v20  ;;  %1074 = vmatpush3.msra.mxu1 %v874_v50 }
 0x221   :  { %1065 = vmatprep.mubr.f32.mxu0 %v477_v63  ;;  %v475_v16 = vadd.f32 %v468_v38, %v455_v39  ;;  %1075 = vmatprep.subr.mxu1 %v873_v23 }
 0x222   :  { %1066 = vmatmul.mubr.f32.vlgmr.msra.gmra.mxu0 %v478_v22  ;;  %v480_v45 = vmax.f32 %v476_v42, 0.0  ;;  %1076 = vmatpush3.msra.mxu1 %v873_v23 }
 0x223   :  { %v479_v41 = vmax.f32 %v475_v16, 0.0  ;;  %1077 = vmatprep.subr.mxu1 %v872_v24 }
 0x224   :  { %1078 = vmatpush3.msra.mxu1 %v872_v24 }
 0x225   :  { %1068 = vmatprep.mubr.f32.mxu0 %v479_v41  ;;  %1079 = vmatprep.subr.mxu1 %v871_v25 }
 0x226   :  { %1069 = vmatmul.mubr.f32.gmra.mxu0 %v480_v45  ;;  %1080 = vmatpush3.msra.mxu1 %v871_v25 }
 0x227   :  { %1081 = vmatprep.subr.mxu1 %v870_v26 }
 0x228   :  { %1082 = vmatpush3.msra.mxu1 %v870_v26 }
 0x229   :  { %1083 = vmatprep.subr.mxu1 %v869_v27 }
 0x22a   :  { %1084 = vmatpush3.msra.mxu1 %v869_v27 }
 0x22b   :  { %1085 = vmatprep.subr.mxu1 %v868_v28 }
 0x22c   :  { %1086 = vmatpush3.msra.mxu1 %v868_v28 }
 0x22d   :  { %1087 = vmatprep.subr.mxu1 %v867_v29 }
 0x22e   :  { %1088 = vmatpush3.msra.mxu1 %v867_v29 }
 0x22f   :  { %1089 = vmatprep.subr.mxu1 %v866_v30 }
 0x230   :  { %1090 = vmatpush3.msra.mxu1 %v866_v30 }
 0x231   :  { %1091 = vmatprep.subr.mxu1 %v865_v31 }
 0x232   :  { %1092 = vmatpush3.msra.mxu1 %v865_v31 }
 0x233   :  { %1093 = vmatprep.subr.mxu1 %v864_v32 }
 0x234   :  { %1094 = vmatpush3.msra.mxu1 %v864_v32 }
 0x235   :  { %1095 = vmatprep.subr.mxu1 %v863_v33 }
 0x236   :  { %1096 = vmatpush3.msra.mxu1 %v863_v33 }
 0x237   :  { %1097 = vmatprep.subr.mxu1 %v862_v34 }
 0x238   :  { %1098 = vmatpush3.msra.mxu1 %v862_v34 }
 0x239   :  { %1099 = vmatprep.subr.mxu1 %v861_v35 }
 0x23a   :  { %1100 = vmatpush3.msra.mxu1 %v861_v35 }
 0x23b   :  { %1101 = vmatprep.subr.mxu1 %v860_v37 }
 0x23c   :  { %1102 = vmatpush3.msra.mxu1 %v860_v37 }
 0x2e2   :  { %v1443_v40 = vpop.f32.mrf.mxu0 }
 0x2e3   :  { %v591_v43 = vrot.slane %v1443_v40, 4 }
 0x2e4   :  { %v1446_v44 = vpop.f32.mrf.mxu0 }
 0x2e5   :  { %v592_v47 = vadd.f32 %v1443_v40, %v591_v43  ;;  %v585_v48 = vrot.slane %v1446_v44, 4 }
 0x2e6   :  { %v1450_v49 = vpop.f32.mrf.mxu0 }
 0x2e7   :  { %v593_v51 = vrot.slane %v592_v47, 2  ;;  %v586_v53 = vadd.f32 %v585_v48, %v1446_v44  ;;  %v603_v54 = vrot.slane %v1450_v49, 4 }
 0x2e8   :  { %v1454_v55 = vpop.f32.mrf.mxu0 }
 0x2e9   :  { %v594_v56 = vadd.f32 %v593_v51, %v592_v47  ;;  %v587_v57 = vrot.slane %v586_v53, 2  ;;  %v604_v59 = vadd.f32 %v1450_v49, %v603_v54  ;;  %v597_v60 = vrot.slane %v1454_v55, 4 }
 0x2eb   :  { %v595_v61 = vrot.slane %v594_v56, 1  ;;  %v588_v62 = vadd.f32 %v587_v57, %v586_v53  ;;  %v605_v0 = vrot.slane %v604_v59, 2  ;;  %v598_v1 = vadd.f32 %v597_v60, %v1454_v55  ;;  %v498_v60 = vld [vmem:[%s1498_s2 + $0x4] sm:$0x1] }
 0x2ed   :  { %v596_v3 = vadd.f32 %v595_v61, %v594_v56  ;;  %v589_v5 = vrot.slane %v588_v62, 1  ;;  %v606_v6 = vadd.f32 %v605_v0, %v604_v59  ;;  %v599_v58 = vrot.slane %v598_v1, 2 }
 0x2ef   :  { %v610_v8 = vmul.f32 0.125, %v596_v3  ;;  %v590_v10 = vadd.f32 %v589_v5, %v588_v62  ;;  %v607_v11 = vrot.slane %v606_v6, 1  ;;  %v600_v12 = vadd.f32 %v599_v58, %v598_v1  ;;  %v499_v1 = vld [vmem:[%s1498_s2 + $0x5] sm:$0x1] }
 0x2f1   :  { %v614_v13 = vsub.f32 %v1443_v40, %v610_v8  ;;  %v609_v14 = vmul.f32 0.125, %v590_v10  ;;  %v608_v15 = vadd.f32 %v607_v11, %v606_v6  ;;  %v601_v2 = vrot.slane %v600_v12, 1 }
 0x2f3   :  { %v618_v4 = vmul.f32 %v614_v13, %v614_v13  ;;  %v613_v36 = vsub.f32 %v1446_v44, %v609_v14  ;;  %v612_v7 = vmul.f32 0.125, %v608_v15  ;;  %v602_v17 = vadd.f32 %v601_v2, %v600_v12 }
 0x2f5   :  { %v627_v18 = vrot.slane %v618_v4, 4  ;;  %v617_v19 = vmul.f32 %v613_v36, %v613_v36  ;;  %v616_v9 = vsub.f32 %v1450_v49, %v612_v7  ;;  %v611_v20 = vmul.f32 0.125, %v602_v17 }
 0x2f7   :  { %v628_v21 = vadd.f32 %v627_v18, %v618_v4  ;;  %v621_v39 = vrot.slane %v617_v19, 4  ;;  %v620_v63 = vmul.f32 %v616_v9, %v616_v9  ;;  %v615_v38 = vsub.f32 %v1454_v55, %v611_v20 }
 0x2f9   :  { %v629_v22 = vrot.slane %v628_v21, 2  ;;  %v622_v42 = vadd.f32 %v621_v39, %v617_v19  ;;  %v639_v16 = vrot.slane %v620_v63, 4  ;;  %v619_v41 = vmul.f32 %v615_v38, %v615_v38 }
 0x2fb   :  { %v630_v45 = vadd.f32 %v629_v22, %v628_v21  ;;  %v623_v46 = vrot.slane %v622_v42, 2  ;;  %v640_v50 = vadd.f32 %v639_v16, %v620_v63  ;;  %v633_v23 = vrot.slane %v619_v41, 4 }
 0x2fd   :  { %v631_v24 = vrot.slane %v630_v45, 1  ;;  %v624_v25 = vadd.f32 %v623_v46, %v622_v42  ;;  %v641_v26 = vrot.slane %v640_v50, 2  ;;  %v634_v27 = vadd.f32 %v633_v23, %v619_v41 }
 0x2ff   :  { %v632_v28 = vadd.f32 %v631_v24, %v630_v45  ;;  %v625_v29 = vrot.slane %v624_v25, 1  ;;  %v642_v30 = vadd.f32 %v641_v26, %v640_v50  ;;  %v635_v31 = vrot.slane %v634_v27, 2 }
 0x301   :  { %v646_v32 = vmul.f32 0.125, %v632_v28  ;;  %v626_v33 = vadd.f32 %v625_v29, %v624_v25  ;;  %v643_v34 = vrot.slane %v642_v30, 1  ;;  %v636_v35 = vadd.f32 %v635_v31, %v634_v27 }
 0x303   :  { %v650_v37 = vadd.f32 1e-05, %v646_v32  ;;  %v645_v43 = vmul.f32 0.125, %v626_v33  ;;  %v644_v47 = vadd.f32 %v643_v34, %v642_v30  ;;  %v637_v48 = vrot.slane %v636_v35, 1 }
 0x305   :  { %1125 = vrsqrt.f32 %v650_v37  ;;  %v649_v51 = vadd.f32 1e-05, %v645_v43  ;;  %v648_v53 = vmul.f32 0.125, %v644_v47  ;;  %v638_v54 = vadd.f32 %v637_v48, %v636_v35 }
 0x307   :  { %1127 = vrsqrt.f32 %v649_v51  ;;  %v652_v56 = vadd.f32 1e-05, %v648_v53  ;;  %v647_v57 = vmul.f32 0.125, %v638_v54 }
 0x309   :  { %1129 = vrsqrt.f32 %v652_v56  ;;  %v651_v59 = vadd.f32 1e-05, %v647_v57 }
 0x30b   :  { %1131 = vrsqrt.f32 %v651_v59 }
 0x312   :  { %v1126_v61 = vpop.eup %1125 }
 0x313   :  { %v658_v62 = vmul.f32 %v1126_v61, %v498_v60 }
 0x314   :  { %v1128_v0 = vpop.eup %1127 }
 0x315   :  { %v662_v3 = vmul.f32 %v658_v62, %v610_v8  ;;  %v657_v5 = vmul.f32 %v1128_v0, %v498_v60  ;;  %v676_v58 = vrot.slane %v658_v62, %v1290_v52 }
 0x316   :  { %v1130_v6 = vpop.eup %1129 }
 0x317   :  { %v666_v10 = vsub.f32 %v499_v1, %v662_v3  ;;  %v661_v11 = vmul.f32 %v657_v5, %v609_v14  ;;  %v672_v12 = vrot.slane %v657_v5, %v1290_v52  ;;  %v660_v15 = vmul.f32 %v1130_v6, %v498_v60 }
 0x318   :  { %v1132_v13 = vpop.eup %1131  ;;  %v686_v17 = vmul.f32 %v1443_v40, %v676_v58 }
 0x319   :  { %v696_v2 = vrot.slane %v666_v10, %v1290_v52  ;;  %v659_v4 = vmul.f32 %v1132_v13, %v498_v60  ;;  %v665_v36 = vsub.f32 %v499_v1, %v661_v11  ;;  %v664_v18 = vmul.f32 %v660_v15, %v612_v7 }
 0x31a   :  { %v684_v19 = vrot.slane %v660_v15, %v1290_v52  ;;  %v685_v8 = vmul.f32 %v672_v12, %v1446_v44 }
 0x31b   :  { %v663_v9 = vmul.f32 %v659_v4, %v611_v20  ;;  %v680_v21 = vrot.slane %v659_v4, %v1290_v52  ;;  %v692_v14 = vrot.slane %v665_v36, %v1290_v52  ;;  %v706_v39 = vadd.f32 %v696_v2, %v686_v17 }
 0x31c   :  { %v668_v63 = vsub.f32 %v499_v1, %v664_v18  ;;  %v688_v42 = vmul.f32 %v1450_v49, %v684_v19  ;;  %v876_v49 = vld [vmem:[%s1498_s2 + $0x6] ss:$0 sm:$0xff] }
 0x31d   :  { %v705_v38 = vadd.f32 %v692_v14, %v685_v8  ;;  %v667_v22 = vsub.f32 %v499_v1, %v663_v9  ;;  %v687_v40 = vmul.f32 %v680_v21, %v1454_v55  ;;  %v710_v45 = vmax.f32 %v706_v39, 0.0 }
 0x31e   :  { %v704_v16 = vrot.slane %v668_v63, %v1290_v52 }
 0x31f   :  { %v709_v7 = vmax.f32 %v705_v38, 0.0  ;;  %v700_v41 = vrot.slane %v667_v22, %v1290_v52 }
 0x320   :  { %v708_v44 = vadd.f32 %v704_v16, %v688_v42 }
 0x321   :  { %1103 = vmatprep.mubr.f32.mxu1 %v709_v7  ;;  %v707_v20 = vadd.f32 %v700_v41, %v687_v40 }
 0x322   :  { %1104 = vmatmul.mubr.f32.vlgmr.msra.gmra.mxu1 %v710_v45  ;;  %v712_v50 = vmax.f32 %v708_v44, 0.0 }
 0x323   :  { %v711_v46 = vmax.f32 %v707_v20, 0.0 }
 0x325   :  { %1106 = vmatprep.mubr.f32.mxu1 %v711_v46 }
 0x326   :  { %1107 = vmatmul.mubr.f32.gmra.mxu1 %v712_v50 }
 0x3e2   :  { %v1105_v23 = vpop.f32.mrf.mxu1 }
 0x3e3   :  { %v807_v24 = vadd.f32 %v1105_v23, %v876_v49 }
 0x3e4   :  { %v801_v25 = vpop.f32.mrf.mxu1 }
 0x3e5   :  { %821 = vst [vmem:[%s1499_s3 + $0x8] sm:$0xff] %v807_v24  ;;  %v802_v52 = vadd.f32 %v876_v49, %v801_v25 }
 0x3e6   :  { %v1108_v55 = vpop.f32.mrf.mxu1 }
 0x3e7   :  { %820 = vst [vmem:[%s1499_s3] sm:$0xff] %v802_v52  ;;  %v817_v26 = vadd.f32 %v1108_v55, %v876_v49 }
 0x3e8   :  { %v811_v27 = vpop.f32.mrf.mxu1 }
 0x3e9   :  { %823 = vst [vmem:[%s1499_s3 + $0x18] sm:$0xff] %v817_v26  ;;  %v812_v28 = vadd.f32 %v876_v49, %v811_v27 }
 0x3eb   :  { %822 = vst [vmem:[%s1499_s3 + $0x10] sm:$0xff] %v812_v28 }

</bundles_post_ra>
